<compile_context>
chip_gen: v5e
topology: v5e:2x2
jax: 0.10.0
libtpu: 0.0.40
codegen_flags: <defaults>
</compile_context>

<pallas_src>
import math

import jax
import jax.numpy as jnp
import numpy as np
from jax.experimental import pallas as pl
from jax.experimental.pallas import tpu as pltpu

_LANE = 128


def _mse_ones_kernel(x_ref, o_ref, acc_ref):
    """x_ref  : (TR, 128) tile of the flattened input (original dtype)
       o_ref  : (1, 1) f32 total sum of squared error (written at last step)
       acc_ref: (1, 128) f32 per-lane partial accumulator (resident across grid)"""
    i = pl.program_id(0)

    @pl.when(i == 0)
    def _():
        acc_ref[...] = jnp.zeros_like(acc_ref)

    # Cast the whole tile once, subtract the constant target (1.0), square, and
    # reduce only over sublanes per step (cheap); keep lane partials in VMEM.
    d = x_ref[...].astype(jnp.float32) - 1.0
    acc_ref[...] += jnp.sum(d * d, axis=0, keepdims=True)

    @pl.when(i == pl.num_programs(0) - 1)
    def _():
        # Single cross-lane (XLU) reduce for the whole kernel.
        o_ref[...] = jnp.sum(acc_ref[...], axis=1, keepdims=True)


def gan_loss_train(x, *, block_rows=512):
    """Pallas implementation of GanLosstrain.forward: mean((x - 1)^2) -> scalar f32."""
    n = int(math.prod(x.shape))
    rows_needed = -(-n // _LANE)                      # cdiv(n, 128)
    tr = max(8, int(min(block_rows, -(-rows_needed // 8) * 8)))  # multiple of 8
    rows_padded = -(-rows_needed // tr) * tr
    n_pad = rows_padded * _LANE

    xf = x.reshape(-1)
    if n_pad != n:
        # Pad with the target value (1.0): padded elements contribute zero error.
        xf = jnp.concatenate([xf, jnp.ones((n_pad - n,), x.dtype)])
    x2d = xf.reshape(rows_padded, _LANE)

    total = pl.pallas_call(
        _mse_ones_kernel,
        out_shape=jax.ShapeDtypeStruct((1, 1), jnp.float32),
        grid=(rows_padded // tr,),
        in_specs=[pl.BlockSpec((tr, _LANE), lambda i: (i, 0))],
        out_specs=pl.BlockSpec((1, 1), lambda i: (0, 0)),
        scratch_shapes=[pltpu.VMEM((1, _LANE), jnp.float32)],
        compiler_params=pltpu.CompilerParams(
            dimension_semantics=("arbitrary",)),      # reduction axis carries acc/out
    )(x2d)
    # nn.MSELoss default reduction='mean': divide by the true element count.
    return total[0, 0] / jnp.float32(n)


if __name__ == "__main__":
    key = jax.random.PRNGKey(0)
    B, C, H, W = 2, 4, 16, 16
    x = jax.random.normal(key, (B, C, H, W), jnp.float32)

    # block_rows=8 -> grid of 2 steps at this size, exercising the accumulation path.
    loss = gan_loss_train(x, block_rows=8)
    loss = jax.block_until_ready(loss)

    ref = np.mean((np.asarray(x, np.float32) - 1.0) ** 2)
    assert np.asarray(loss).shape == ()
    assert np.allclose(np.asarray(loss), ref, atol=1e-6, rtol=1e-6), (loss, ref)

    # Also check a ragged size (forces the 1.0-pad path) at a different block size.
    x2 = jax.random.normal(jax.random.PRNGKey(1), (3, 5, 7), jnp.float32)
    loss2 = jax.block_until_ready(gan_loss_train(x2))
    ref2 = np.mean((np.asarray(x2, np.float32) - 1.0) ** 2)
    assert np.allclose(np.asarray(loss2), ref2, atol=1e-6, rtol=1e-6), (loss2, ref2)

    print("KERNEL_OK")
</pallas_src>

<mosaic_0001>
module attributes {stable_mosaic.version = 11 : i64} {
  func.func @_mse_ones_kernel(%arg0: i32, %arg1: memref<8x128xf32, #tpu.memory_space<vmem>>, %arg2: memref<1x1xf32, #tpu.memory_space<vmem>>, %arg3: memref<1x128xf32, #tpu.memory_space<vmem>>) attributes {dimension_semantics = [#tpu.dimension_semantics<arbitrary>], iteration_bounds = array<i64: 2>, scalar_prefetch = 0 : i64, scratch_operands = 1 : i64, tpu.core_type = #tpu.core_type<tc>, window_params = [{transform_indices = @transform_0, window_bounds = array<i64: 8, 128>}, {pipeline_mode = #tpu.pipeline_mode<synchronous>, transform_indices = @transform_1, window_bounds = array<i64: 1, 1>}]} {
    %c0_i32 = arith.constant 0 : i32
    %0 = arith.cmpi eq, %arg0, %c0_i32 : i32
    %1 = arith.extui %0 : i1 to i32
    %c0_i32_0 = arith.constant 0 : i32
    %2 = arith.cmpi ne, %1, %c0_i32_0 : i32
    scf.if %2 {
      %cst_8 = arith.constant 0.000000e+00 : f32
      %15 = vector.broadcast %cst_8 : f32 to vector<1x128xf32>
      %c0_9 = arith.constant 0 : index
      %c0_10 = arith.constant 0 : index
      %16 = vector.load %arg3[%c0_9, %c0_10] : memref<1x128xf32, #tpu.memory_space<vmem>>, vector<1x128xf32>
      tpu.vector_store %arg3[%c0_9, %c0_10], %15 {strides = array<i32>} : memref<1x128xf32, #tpu.memory_space<vmem>>, vector<1x128xf32>,
    } else {
    }
    %c0 = arith.constant 0 : index
    %c0_1 = arith.constant 0 : index
    %3 = vector.load %arg1[%c0, %c0_1] : memref<8x128xf32, #tpu.memory_space<vmem>>, vector<8x128xf32>
    %cst = arith.constant 1.000000e+00 : f32
    %4 = vector.broadcast %cst : f32 to vector<8x128xf32>
    %5 = arith.subf %3, %4 : vector<8x128xf32>
    %c0_2 = arith.constant 0 : index
    %c0_3 = arith.constant 0 : index
    %6 = vector.load %arg3[%c0_2, %c0_3] : memref<1x128xf32, #tpu.memory_space<vmem>>, vector<1x128xf32>
    %7 = arith.mulf %5, %5 : vector<8x128xf32>
    %cst_4 = arith.constant dense<0.000000e+00> : vector<128xf32>
    %8 = vector.multi_reduction <add>, %7, %cst_4 [0] : vector<8x128xf32> to vector<128xf32>
    %9 = vector.shape_cast %8 : vector<128xf32> to vector<1x128xf32>
    %10 = arith.addf %6, %9 : vector<1x128xf32>
    %c0_5 = arith.constant 0 : index
    %c0_6 = arith.constant 0 : index
    %11 = vector.load %arg3[%c0_5, %c0_6] : memref<1x128xf32, #tpu.memory_space<vmem>>, vector<1x128xf32>
    tpu.vector_store %arg3[%c0_5, %c0_6], %10 {strides = array<i32>} : memref<1x128xf32, #tpu.memory_space<vmem>>, vector<1x128xf32>,
    %c1_i32 = arith.constant 1 : i32
    %12 = arith.cmpi eq, %arg0, %c1_i32 : i32
    %13 = arith.extui %12 : i1 to i32
    %c0_i32_7 = arith.constant 0 : i32
    %14 = arith.cmpi ne, %13, %c0_i32_7 : i32
    scf.if %14 {
      %c0_8 = arith.constant 0 : index
      %c0_9 = arith.constant 0 : index
      %15 = vector.load %arg3[%c0_8, %c0_9] : memref<1x128xf32, #tpu.memory_space<vmem>>, vector<1x128xf32>
      %cst_10 = arith.constant dense<0.000000e+00> : vector<1xf32>
      %16 = vector.multi_reduction <add>, %15, %cst_10 [1] : vector<1x128xf32> to vector<1xf32>
      %17 = vector.shape_cast %16 : vector<1xf32> to vector<1x1xf32>
      %c0_11 = arith.constant 0 : index
      %c0_12 = arith.constant 0 : index
      %18 = vector.load %arg2[%c0_11, %c0_12] : memref<1x1xf32, #tpu.memory_space<vmem>>, vector<1x1xf32>
      tpu.vector_store %arg2[%c0_11, %c0_12], %17 {strides = array<i32>} : memref<1x1xf32, #tpu.memory_space<vmem>>, vector<1x1xf32>,
    } else {
    }
    return
  }
  func.func @transform_0(%arg0: i32) -> (i32, i32) {
    %c0_i32 = arith.constant 0 : i32
    %c0_i32_0 = arith.constant 0 : i32
    return %arg0, %c0_i32 : i32, i32
  }
  func.func @transform_1(%arg0: i32) -> (i32, i32) {
    %c0_i32 = arith.constant 0 : i32
    %c0_i32_0 = arith.constant 0 : i32
    %c0_i32_1 = arith.constant 0 : i32
    return %c0_i32, %c0_i32_0 : i32, i32
  }
}

</mosaic_0001>

<bundles_post_ra>
// kernel: tpu_custom_call.1
= control target key start
LH: loop header
LB: loop body
LE: loop exit
PB: predicated region body
PF: predicated region fallthrough
CT: control target
= control target key end

     0   :  { %6 = vsyncpa [#allocation4], 0  ;;  %s475_s0 = inlined_call_operand.hbm [shape: f32[16,128], index: 0, kind: input, shape index: {}]   ;;  %s476_s1 = inlined_call_operand.hbm [shape: f32[1,1], index: 1, kind: output, shape index: {}]  }
   0x1   :  { %8 = vsyncpa [#allocation4 + $0x1], 0 }
   0x2   :  { %9 = vsyncpa [#allocation5], 0  ;;  %s380_s6 = smov 0   ;;  %s382_s7 = smov 0  }
   0x3   :  { %s384_s8 = smov 0   ;;  %s386_s9 = smov 0  }
   0x4 LB: > { %s399_s10 = sadd.s32 4294967295, %s366_s9   ;;  %s402_s11 = sadd.s32 1, %s366_s9   ;;  %s366_s9 = sphi %s386_s9, %s483_s9   ;;  %s362_s8 = sphi %s384_s8, %s482_s8   ;;  %s358_s7 = sphi %s382_s7, %s481_s7   ;;  %s354_s6 = sphi %s380_s6, %s480_s6  }
   0x5   : > { %s19_s12 = ssub.s32 %s366_s9, %s402_s11  ;;  %s22_s13 = sadd.s32 1, %s362_s8 }
   0x6   : > { %p20_p0 = scmp.eq.s32.totalorder %s19_s12, 0  ;;  %p29_p1 = scmp.ne.s32.totalorder %s362_s8, %s358_s7 }
   0x7   : > { %p30_p2 = scmp.eq.s32.totalorder %s366_s9, 0  ;;  %p35_p3 = scmp.ne.s32.totalorder %s358_s7, %s354_s6 }
   0x8   : > { %s412_s14 = scalar_select %p20_p0, %s362_s8, %s22_s13  }
   0x9   : > { %p414_p4 = por %p30_p2, %p29_p1  ;;  %p36_p5 = scmp.eq.s32.totalorder %s399_s10, 0 }
   0xa   : > { %p233_p6 = scmp.lt.s32.totalorder %s366_s9, 2  ;;  %s80_s17 = sand.u32 1, %s362_s8  }
   0xb   : > { %p420_p7 = por %p36_p5, %p35_p3  ;;  %s212_s18 = sshll.u32 %s80_s17, 3 }
   0xc   : > { %s213_s19 = sshll.u32 %s366_s9, 3  ;;  %s84_s23 = scalar_lea.vmem [#allocation3], %s212_s18 }
   0xd   : > { %s88_s22 = scalar_lea.hbm %s475_s0, %s213_s19  ;;  %s92_s24 = sshll.u32 %s84_s23, 4  ;;  %s93_s24 = int_to_ptr.vmem [resolvable:$true] %s92_s24 }
   0xe   : > { %s90_s25 = sshll.u32 %s88_s22, 4  ;;  %p431_p8 = pnand %p233_p6, %p414_p4  ;;  %s91_s25 = int_to_ptr.hbm [resolvable:$true] %s90_s25 }
   0xf   : > { %p214_p9 = scmp.ge.s32.totalorder %s366_s9, 1  ;;  %p97_p10 = scmp.lt.s32.totalorder %s366_s9, 3 }
  0x10   : > { %s81_s27 = scalar_lea.sflag [#allocation4], %s80_s17  ;;  %s270_s28 = sshra.s32 %s91_s25, 4  ;;  %s271_s28 = int_to_ptr.hbm [resolvable:$true] %s270_s28 }
  0x11   : > { %s272_s29 = scalar_lea.hbm %s271_s28, 8  ;;  %p274_p12 = pneg %p431_p8 }
  0x12   : > { %p273_p11 = scmp.ne.s32.totalorder %s271_s28, %s272_s29  ;;  %s277_s3 = scalar_lea.hbm %s475_s0, 16 }
  0x13   : > { %p278_p1 = scmp.lt.s32.totalorder %s271_s28, %s475_s0  ;;  %p279_p2 = scmp.lt.s32.totalorder %s277_s3, %s272_s29 }
  0x14   : > { %p275_p13 = pnand %p274_p12, %p273_p11 }
  0x15   : > { %p280_p3 = por %p279_p2, %p278_p1 }
  0x16   : > { %p276_p0 = pneg %p275_p13 }
  0x18   : > { %p281_p4 = pnand %p280_p3, %p276_p0 }
  0x1a   : > { %284 = shalt.err (!%p281_p4)
}
  0x1b   : > { %232 = dma.hbm_to_vmem [thread:$0]  (!%p431_p8), %s91_s25, 128, %s93_s24, %s81_s27  }
  0x1c   : > { %p98_p5 = pnand %p214_p9, %p97_p10 }
  0x1d   : > { %s103_s6 = sand.u32 (!%p98_p5), 1, %s358_s7  }
  0x1e   : > { %101 = sbr.rel (%p98_p5) target bundleno = 195 (0xc3), region = 24  ;;  %s215_s12 = sshll.u32 (!%p98_p5), %s103_s6, 3 }
  0x1f   : > { %s104_s13 = scalar_lea.sflag (!%p98_p5), [#allocation4], %s103_s6  ;;  %s107_s15 = scalar_lea.vmem (!%p98_p5), [#allocation3], %s215_s12 }
  0x23   : > { %345 = dma.done.wait (%p420_p7), %s104_s13, 128  }
  0x24   : > { %347 = vsyncadd (%p420_p7), %s104_s13, 4294967168  ;;  %p216_p6 = scmp.ne.s32.totalorder %s399_s10, 0 }
  0x26   : > { %125 = sbr.rel (%p216_p6) target bundleno = 45 (0x2d), region = 32 }
  0x2b   : > { %v368_v0 = vmov 0.0  }
  0x2c   : > { %126 = vst [vmem:[#allocation2] sm:$0x1] %v368_v0 }
  0x2d PF: > { %v127_v1 = vld [vmem:[%s107_s15] sm:$0xff]  ;;  %p218_p7 = scmp.ne.s32.totalorder %s399_s10, 1 }
  0x2e   : > { %v217_v2 = vadd.f32 -1.0, %v127_v1 }
  0x30   : > { %v130_v3 = vmul.f32 %v217_v2, %v217_v2 }
  0x32   : > { %v131_v4 = vrot.slane %v130_v3, 4 }
  0x33   : > { %v129_v9 = vld [vmem:[#allocation2] sm:$0x1] }
  0x34   : > { %v132_v5 = vadd.f32 %v131_v4, %v130_v3 }
  0x36   : > { %v133_v6 = vrot.slane %v132_v5, 2 }
  0x38   : > { %v134_v7 = vadd.f32 %v133_v6, %v132_v5 }
  0x3a   : > { %v135_v8 = vrot.slane %v134_v7, 1 }
  0x3c   : > { %v136_v10 = vadd.f32 %v135_v8, %v134_v7  ;;  %142 = sbr.rel (%p218_p7) target bundleno = 190 (0xbe), region = 36 }
  0x3e   : > { %v137_v11 = vadd.f32 %v136_v10, %v129_v9 }
  0x40   : > { %138 = vst [vmem:[#allocation2] sm:$0x1] %v137_v11 }
  0x41   : > { %vm144_vm0 = vcmask 1040384   ;;  %vm148_vm1 = vcmask 0  }
  0x47   : > { %v143_v12 = vld [vmem:[#allocation2] sm:$0x1] }
  0x48   : > { %v145_v13 = vsel %vm144_vm0, %v143_v12, 0.0 }
  0x49   : > { %146 = vadd.xlane.f32.xlu0 %v145_v13 }
  0xbc   : > { %v147_v14 = vpop.xlane.xlu0 %146 }
  0xbd   : > { %149 = vst.msk [vmem:[#allocation6] sm:$0x1] %vm148_vm1, %v147_v14 }
  0xbe PF: > { %p234_p8 = scmp.eq.s32.totalorder %s399_s10, 1  ;;  %s369_s9 = smov [#allocation6]  }
  0xbf   : > { %s156_s16 = sshll.u32 %s369_s9, 4  ;;  %s158_s19 = sshll.u32 %s476_s1, 4  ;;  %s157_s16 = int_to_ptr.vmem [resolvable:$true] %s156_s16  ;;  %s159_s19 = int_to_ptr.hbm [resolvable:$true] %s158_s19 }
  0xc0   : > { %226 = dma.vmem_to_hbm [thread:$0]  (%p234_p8), %s157_s16, 16, %s159_s19, [#allocation5]  }
  0xc1   : > { %349 = dma.done.wait (%p234_p8), [#allocation5], 16  }
  0xc2   : > { %351 = vsyncadd (%p234_p8), [#allocation5], 4294967280 }
  0xc3 PF: > { %p12_p9 = scmp.ge.s32.totalorder %s402_s11, 4   ;;  %s480_s6 = smov %s358_s7 }
  0xc4   : > { %s481_s7 = smov %s362_s8  ;;  %s482_s8 = smov %s412_s14 }
  0xc5   : > { %s483_s9 = smov %s402_s11  ;;  %14 = sbr.rel (!%p12_p9) target bundleno = 4 (0x4), region = 69 }
  0xca   :  { %172 = vsyncpa [#allocation4], 1 }
  0xcb   :  { %174 = vsyncpa [#allocation4 + $0x1], 1 }
  0xcc   :  { %175 = vsyncpa [#allocation5], 1 }
  0xcd   :  { %177 = vsyncpa [#allocation5 + $0x1], 1 }

</bundles_post_ra>
